<compile_context>
chip_gen: v7x
topology: tpu7x:2x2x1
jax: 0.10.0
libtpu: 0.0.40
codegen_flags: <defaults>
</compile_context>

<pallas_src>
import functools

import jax
import jax.numpy as jnp
import numpy as np
from jax.experimental import pallas as pl
from jax.experimental.pallas import tpu as pltpu

BN_EPS = 1e-5
NUM_LAYERS = 3


# ---------------------------------------------------------------------------
# Phase 1: streamed spatial mean (elementwise-accumulated) + MLP -> gate (N, C)
# ---------------------------------------------------------------------------
def _pool_mlp_kernel(x_ref,
                     w0, b0, g0, bt0,
                     w1, b1, g1, bt1,
                     w2, b2, g2, bt2,
                     wl, bl,
                     gate_ref, acc_ref, *, hw, hw_tile):
    k = pl.program_id(0)

    @pl.when(k == 0)
    def _init():
        acc_ref[...] = jnp.zeros_like(acc_ref)

    tile = x_ref[...]                                    # (N, C, hw_tile)
    if hw % hw_tile != 0:
        # Ragged tail: zero lanes past the true spatial extent so they do not
        # contribute to the sum (cheap VPU select; `hw`, `hw_tile` are static).
        lane = jax.lax.broadcasted_iota(jnp.int32, tile.shape, 2)
        tile = jnp.where(k * hw_tile + lane < hw, tile, 0.0)

    # Elementwise accumulation stays in the VPU slot; the cross-lane reduce
    # happens exactly once, at the final grid step below.
    acc_ref[...] += tile

    @pl.when(k == pl.num_programs(0) - 1)
    def _finalize():
        pooled = jnp.sum(acc_ref[...], axis=-1) * (1.0 / hw)     # (N, C)

        def fc_bn_relu(h, w_r, b_r, g_r, bt_r):
            # Linear (weights stored as (in, out) so we can dot directly)
            y = jnp.dot(h, w_r[...], preferred_element_type=jnp.float32) + b_r[...]
            # BatchNorm1d, training mode: batch mean / biased batch variance
            mu = jnp.mean(y, axis=0, keepdims=True)
            var = jnp.mean((y - mu) * (y - mu), axis=0, keepdims=True)
            yn = (y - mu) * jax.lax.rsqrt(var + BN_EPS)
            return jnp.maximum(yn * g_r[...] + bt_r[...], 0.0)

        h = fc_bn_relu(pooled, w0, b0, g0, bt0)
        h = fc_bn_relu(h, w1, b1, g1, bt1)
        h = fc_bn_relu(h, w2, b2, g2, bt2)
        gate_ref[...] = jnp.dot(h, wl[...],
                                preferred_element_type=jnp.float32) + bl[...]


# ---------------------------------------------------------------------------
# Phase 2: broadcast the (N, C) gate over HW with lane-dense output tiles
# ---------------------------------------------------------------------------
def _broadcast_kernel(gate_ref, out_ref):
    out_ref[...] = jnp.broadcast_to(gate_ref[...][:, :, None], out_ref.shape)


def _choose_hw_tile(n, c, hw, target_bytes=2 * 1024 * 1024):
    """Lane-dense HW tile: full HW for small maps, otherwise a multiple of 128
    sized to ~target_bytes per streamed (N, C, tile) block so double-buffered
    tiles fit the default scoped-VMEM budgets of v5e/v6e/v7x."""
    if hw <= 256:
        return hw                                   # full dim (always legal)
    max_lanes = max(128, target_bytes // (n * c * 4))
    tile = min(hw, int(max_lanes))
    return max(128, (tile // 128) * 128)            # keep stores unmasked


def channel_attention_forward(x, params, hw_tile=None):
    """x: (N, C, H, W) float32. Returns (N, C, H, W) float32."""
    N, C, H, W = x.shape
    HW = H * W
    x_flat = x.reshape(N, C, HW)

    if hw_tile is None:
        hw_tile = _choose_hw_tile(N, C, HW)
    num_tiles = pl.cdiv(HW, hw_tile)

    tile_bytes = N * C * hw_tile * 4
    # 2x double-buffered streamed block + accumulator scratch + params/headroom.
    vmem_bytes = min(int(4 * tile_bytes + 4 * 1024 * 1024), 48 * 1024 * 1024)

    # Tiny MLP parameters: whole-array blocks, fetched once (constant index).
    param_specs = [
        pl.BlockSpec(p.shape, (lambda k, _nd=p.ndim: (0,) * _nd)) for p in params
    ]

    # --- Phase 1: pooling (reduction over HW) + MLP gate --------------------
    gate = pl.pallas_call(
        functools.partial(_pool_mlp_kernel, hw=HW, hw_tile=hw_tile),
        out_shape=jax.ShapeDtypeStruct((N, C), jnp.float32),
        grid=(num_tiles,),
        in_specs=[pl.BlockSpec((N, C, hw_tile), lambda k: (0, 0, k))] + param_specs,
        out_specs=pl.BlockSpec((N, C), lambda k: (0, 0)),
        scratch_shapes=[pltpu.VMEM((N, C, hw_tile), jnp.float32)],
        compiler_params=pltpu.CompilerParams(
            dimension_semantics=("arbitrary",),        # reduction axis
            vmem_limit_bytes=vmem_bytes),
    )(x_flat, *params)

    # --- Phase 2: broadcast gate over HW (independent tiles) ----------------
    out_flat = pl.pallas_call(
        _broadcast_kernel,
        out_shape=jax.ShapeDtypeStruct((N, C, HW), jnp.float32),
        grid=(num_tiles,),
        in_specs=[pl.BlockSpec((N, C), lambda k: (0, 0))],
        out_specs=pl.BlockSpec((N, C, hw_tile), lambda k: (0, 0, k)),
        compiler_params=pltpu.CompilerParams(
            dimension_semantics=("parallel",),         # shard across TCs (v7x)
            vmem_limit_bytes=vmem_bytes),
    )(gate)

    return out_flat.reshape(N, C, H, W)


# ---------------------------------------------------------------------------
# Parameter init + pure-JAX reference (for correctness check)
# ---------------------------------------------------------------------------
def init_params(key, channel, reduction=16, num_layers=NUM_LAYERS):
    """Deterministic init matching the module's parameter shapes.
    Linear: weight (in, out) ~ U(-1/sqrt(in), 1/sqrt(in)) (PyTorch default,
    transposed); BatchNorm1d: weight=1, bias=0."""
    dims = [channel] + [channel // reduction] * num_layers + [channel]
    params = []
    keys = jax.random.split(key, num_layers + 1)
    for i in range(num_layers):
        fan_in, fan_out = dims[i], dims[i + 1]
        bound = 1.0 / float(np.sqrt(fan_in))
        kw, kb = jax.random.split(keys[i])
        w = jax.random.uniform(kw, (fan_in, fan_out), jnp.float32, -bound, bound)
        b = jax.random.uniform(kb, (1, fan_out), jnp.float32, -bound, bound)
        gamma = jnp.ones((1, fan_out), jnp.float32)
        beta = jnp.zeros((1, fan_out), jnp.float32)
        params += [w, b, gamma, beta]
    fan_in, fan_out = dims[-2], dims[-1]
    bound = 1.0 / float(np.sqrt(fan_in))
    kw, kb = jax.random.split(keys[-1])
    wl = jax.random.uniform(kw, (fan_in, fan_out), jnp.float32, -bound, bound)
    bl = jax.random.uniform(kb, (1, fan_out), jnp.float32, -bound, bound)
    params += [wl, bl]
    return params


def reference_forward(x, params):
    """Pure-JAX reference with identical math."""
    N, C, H, W = x.shape
    h = jnp.mean(x.reshape(N, C, H * W), axis=-1)
    for i in range(NUM_LAYERS):
        w, b, g, bt = params[4 * i:4 * i + 4]
        y = h @ w + b
        mu = jnp.mean(y, axis=0, keepdims=True)
        var = jnp.mean((y - mu) ** 2, axis=0, keepdims=True)
        h = jnp.maximum((y - mu) / jnp.sqrt(var + BN_EPS) * g + bt, 0.0)
    gate = h @ params[-2] + params[-1]
    return jnp.broadcast_to(gate[:, :, None, None], (N, C, H, W))


if __name__ == "__main__":
    # channel must be >= reduction so channel // reduction > 0 (as in PyTorch).
    N, C, H, W = 2, 64, 32, 32
    reduction = 16

    key = jax.random.PRNGKey(0)
    kx, kp = jax.random.split(key)
    x = jax.random.normal(kx, (N, C, H, W), dtype=jnp.float32)
    params = init_params(kp, C, reduction=reduction, num_layers=NUM_LAYERS)

    ref = jax.block_until_ready(reference_forward(x, params))

    # Multi-step streamed path: HW = 1024, tile = 256 lanes -> grid of 4
    # (exercises init / accumulate / finalize and the tiled broadcast).
    out = jax.block_until_ready(channel_attention_forward(x, params, hw_tile=256))
    np.testing.assert_allclose(np.asarray(out), np.asarray(ref), rtol=1e-3, atol=1e-3)

    # Auto-tiled path (single lane-dense tile for this small map).
    out2 = jax.block_until_ready(channel_attention_forward(x, params))
    np.testing.assert_allclose(np.asarray(out2), np.asarray(ref), rtol=1e-3, atol=1e-3)

    print("KERNEL_OK")
</pallas_src>

<mosaic_0001>
module attributes {stable_mosaic.version = 11 : i64} {
  func.func @_pool_mlp_kernel(%arg0: i32, %arg1: memref<2x64x256xf32, #tpu.memory_space<vmem>>, %arg2: memref<64x4xf32, #tpu.memory_space<vmem>>, %arg3: memref<1x4xf32, #tpu.memory_space<vmem>>, %arg4: memref<1x4xf32, #tpu.memory_space<vmem>>, %arg5: memref<1x4xf32, #tpu.memory_space<vmem>>, %arg6: memref<4x4xf32, #tpu.memory_space<vmem>>, %arg7: memref<1x4xf32, #tpu.memory_space<vmem>>, %arg8: memref<1x4xf32, #tpu.memory_space<vmem>>, %arg9: memref<1x4xf32, #tpu.memory_space<vmem>>, %arg10: memref<4x4xf32, #tpu.memory_space<vmem>>, %arg11: memref<1x4xf32, #tpu.memory_space<vmem>>, %arg12: memref<1x4xf32, #tpu.memory_space<vmem>>, %arg13: memref<1x4xf32, #tpu.memory_space<vmem>>, %arg14: memref<4x64xf32, #tpu.memory_space<vmem>>, %arg15: memref<1x64xf32, #tpu.memory_space<vmem>>, %arg16: memref<2x64xf32, #tpu.memory_space<vmem>>, %arg17: memref<2x64x256xf32, #tpu.memory_space<vmem>>) attributes {dimension_semantics = [#tpu.dimension_semantics<arbitrary>], iteration_bounds = array<i64: 4>, scalar_prefetch = 0 : i64, scratch_operands = 1 : i64, tpu.core_type = #tpu.core_type<tc>, window_params = [{transform_indices = @transform_0, window_bounds = array<i64: 2, 64, 256>}, {pipeline_mode = #tpu.pipeline_mode<synchronous>, transform_indices = @transform_1, window_bounds = array<i64: 64, 4>}, {pipeline_mode = #tpu.pipeline_mode<synchronous>, transform_indices = @transform_2, window_bounds = array<i64: 1, 4>}, {pipeline_mode = #tpu.pipeline_mode<synchronous>, transform_indices = @transform_3, window_bounds = array<i64: 1, 4>}, {pipeline_mode = #tpu.pipeline_mode<synchronous>, transform_indices = @transform_4, window_bounds = array<i64: 1, 4>}, {pipeline_mode = #tpu.pipeline_mode<synchronous>, transform_indices = @transform_5, window_bounds = array<i64: 4, 4>}, {pipeline_mode = #tpu.pipeline_mode<synchronous>, transform_indices = @transform_6, window_bounds = array<i64: 1, 4>}, {pipeline_mode = #tpu.pipeline_mode<synchronous>, transform_indices = @transform_7, window_bounds = array<i64: 1, 4>}, {pipeline_mode = #tpu.pipeline_mode<synchronous>, transform_indices = @transform_8, window_bounds = array<i64: 1, 4>}, {pipeline_mode = #tpu.pipeline_mode<synchronous>, transform_indices = @transform_9, window_bounds = array<i64: 4, 4>}, {pipeline_mode = #tpu.pipeline_mode<synchronous>, transform_indices = @transform_10, window_bounds = array<i64: 1, 4>}, {pipeline_mode = #tpu.pipeline_mode<synchronous>, transform_indices = @transform_11, window_bounds = array<i64: 1, 4>}, {pipeline_mode = #tpu.pipeline_mode<synchronous>, transform_indices = @transform_12, window_bounds = array<i64: 1, 4>}, {pipeline_mode = #tpu.pipeline_mode<synchronous>, transform_indices = @transform_13, window_bounds = array<i64: 4, 64>}, {pipeline_mode = #tpu.pipeline_mode<synchronous>, transform_indices = @transform_14, window_bounds = array<i64: 1, 64>}, {pipeline_mode = #tpu.pipeline_mode<synchronous>, transform_indices = @transform_15, window_bounds = array<i64: 2, 64>}]} {
    %c0_i32 = arith.constant 0 : i32
    %0 = arith.cmpi eq, %arg0, %c0_i32 : i32
    %1 = arith.extui %0 : i1 to i32
    %c0_i32_0 = arith.constant 0 : i32
    %2 = arith.cmpi ne, %1, %c0_i32_0 : i32
    scf.if %2 {
      %cst = arith.constant 0.000000e+00 : f32
      %10 = vector.broadcast %cst : f32 to vector<2x64x256xf32>
      %c0_10 = arith.constant 0 : index
      %c0_11 = arith.constant 0 : index
      %c0_12 = arith.constant 0 : index
      %11 = vector.load %arg17[%c0_10, %c0_11, %c0_12] : memref<2x64x256xf32, #tpu.memory_space<vmem>>, vector<2x64x256xf32>
      tpu.vector_store %arg17[%c0_10, %c0_11, %c0_12], %10 {strides = array<i32>} : memref<2x64x256xf32, #tpu.memory_space<vmem>>, vector<2x64x256xf32>,
    } else {
    }
    %c0 = arith.constant 0 : index
    %c0_1 = arith.constant 0 : index
    %c0_2 = arith.constant 0 : index
    %3 = vector.load %arg1[%c0, %c0_1, %c0_2] : memref<2x64x256xf32, #tpu.memory_space<vmem>>, vector<2x64x256xf32>
    %c0_3 = arith.constant 0 : index
    %c0_4 = arith.constant 0 : index
    %c0_5 = arith.constant 0 : index
    %4 = vector.load %arg17[%c0_3, %c0_4, %c0_5] : memref<2x64x256xf32, #tpu.memory_space<vmem>>, vector<2x64x256xf32>
    %5 = arith.addf %4, %3 : vector<2x64x256xf32>
    %c0_6 = arith.constant 0 : index
    %c0_7 = arith.constant 0 : index
    %c0_8 = arith.constant 0 : index
    %6 = vector.load %arg17[%c0_6, %c0_7, %c0_8] : memref<2x64x256xf32, #tpu.memory_space<vmem>>, vector<2x64x256xf32>
    tpu.vector_store %arg17[%c0_6, %c0_7, %c0_8], %5 {strides = array<i32>} : memref<2x64x256xf32, #tpu.memory_space<vmem>>, vector<2x64x256xf32>,
    %c3_i32 = arith.constant 3 : i32
    %7 = arith.cmpi eq, %arg0, %c3_i32 : i32
    %8 = arith.extui %7 : i1 to i32
    %c0_i32_9 = arith.constant 0 : i32
    %9 = arith.cmpi ne, %8, %c0_i32_9 : i32
    scf.if %9 {
      %c0_10 = arith.constant 0 : index
      %c0_11 = arith.constant 0 : index
      %c0_12 = arith.constant 0 : index
      %10 = vector.load %arg17[%c0_10, %c0_11, %c0_12] : memref<2x64x256xf32, #tpu.memory_space<vmem>>, vector<2x64x256xf32>
      %cst = arith.constant dense<0.000000e+00> : vector<2x64xf32>
      %11 = vector.multi_reduction <add>, %10, %cst [2] : vector<2x64x256xf32> to vector<2x64xf32>
      %cst_13 = arith.constant 9.765625E-4 : f32
      %12 = vector.broadcast %cst_13 : f32 to vector<2x64xf32>
      %13 = arith.mulf %11, %12 : vector<2x64xf32>
      %c0_14 = arith.constant 0 : index
      %c0_15 = arith.constant 0 : index
      %14 = vector.load %arg2[%c0_14, %c0_15] : memref<64x4xf32, #tpu.memory_space<vmem>>, vector<64x4xf32>
      %cst_16 = arith.constant dense<0.000000e+00> : vector<2x4xf32>
      %15 = tpu.matmul %13, %14, %cst_16 {dimension_numbers = #tpu.dot_dimension_numbers<[1], [0], [0], [1], [0, 0, 1, 1], [], []>} : vector<2x64xf32>, vector<64x4xf32>, vector<2x4xf32> -> vector<2x4xf32>
      %c0_17 = arith.constant 0 : index
      %c0_18 = arith.constant 0 : index
      %16 = vector.load %arg3[%c0_17, %c0_18] : memref<1x4xf32, #tpu.memory_space<vmem>>, vector<1x4xf32>
      %17 = vector.broadcast %16 : vector<1x4xf32> to vector<2x4xf32>
      %18 = arith.addf %15, %17 : vector<2x4xf32>
      %cst_19 = arith.constant dense<0.000000e+00> : vector<4xf32>
      %19 = vector.multi_reduction <add>, %18, %cst_19 [0] : vector<2x4xf32> to vector<4xf32>
      %20 = vector.shape_cast %19 : vector<4xf32> to vector<1x4xf32>
      %cst_20 = arith.constant 2.000000e+00 : f32
      %21 = vector.broadcast %cst_20 : f32 to vector<1x4xf32>
      %22 = arith.divf %20, %21 : vector<1x4xf32>
      %23 = vector.broadcast %22 : vector<1x4xf32> to vector<2x4xf32>
      %24 = arith.subf %18, %23 : vector<2x4xf32>
      %25 = vector.broadcast %22 : vector<1x4xf32> to vector<2x4xf32>
      %26 = arith.subf %18, %25 : vector<2x4xf32>
      %27 = arith.mulf %24, %26 : vector<2x4xf32>
      %cst_21 = arith.constant dense<0.000000e+00> : vector<4xf32>
      %28 = vector.multi_reduction <add>, %27, %cst_21 [0] : vector<2x4xf32> to vector<4xf32>
      %29 = vector.shape_cast %28 : vector<4xf32> to vector<1x4xf32>
      %cst_22 = arith.constant 2.000000e+00 : f32
      %30 = vector.broadcast %cst_22 : f32 to vector<1x4xf32>
      %31 = arith.divf %29, %30 : vector<1x4xf32>
      %32 = vector.broadcast %22 : vector<1x4xf32> to vector<2x4xf32>
      %33 = arith.subf %18, %32 : vector<2x4xf32>
      %cst_23 = arith.constant 9.99999974E-6 : f32
      %34 = vector.broadcast %cst_23 : f32 to vector<1x4xf32>
      %35 = arith.addf %31, %34 : vector<1x4xf32>
      %36 = math.rsqrt %35 : vector<1x4xf32>
      %37 = vector.broadcast %36 : vector<1x4xf32> to vector<2x4xf32>
      %38 = arith.mulf %33, %37 : vector<2x4xf32>
      %c0_24 = arith.constant 0 : index
      %c0_25 = arith.constant 0 : index
      %39 = vector.load %arg4[%c0_24, %c0_25] : memref<1x4xf32, #tpu.memory_space<vmem>>, vector<1x4xf32>
      %40 = vector.broadcast %39 : vector<1x4xf32> to vector<2x4xf32>
      %41 = arith.mulf %38, %40 : vector<2x4xf32>
      %c0_26 = arith.constant 0 : index
      %c0_27 = arith.constant 0 : index
      %42 = vector.load %arg5[%c0_26, %c0_27] : memref<1x4xf32, #tpu.memory_space<vmem>>, vector<1x4xf32>
      %43 = vector.broadcast %42 : vector<1x4xf32> to vector<2x4xf32>
      %44 = arith.addf %41, %43 : vector<2x4xf32>
      %cst_28 = arith.constant 0.000000e+00 : f32
      %45 = vector.broadcast %cst_28 : f32 to vector<2x4xf32>
      %46 = arith.maximumf %44, %45 : vector<2x4xf32>
      %c0_29 = arith.constant 0 : index
      %c0_30 = arith.constant 0 : index
      %47 = vector.load %arg6[%c0_29, %c0_30] : memref<4x4xf32, #tpu.memory_space<vmem>>, vector<4x4xf32>
      %cst_31 = arith.constant dense<0.000000e+00> : vector<2x4xf32>
      %48 = tpu.matmul %46, %47, %cst_31 {dimension_numbers = #tpu.dot_dimension_numbers<[1], [0], [0], [1], [0, 0, 1, 1], [], []>} : vector<2x4xf32>, vector<4x4xf32>, vector<2x4xf32> -> vector<2x4xf32>
      %c0_32 = arith.constant 0 : index
      %c0_33 = arith.constant 0 : index
      %49 = vector.load %arg7[%c0_32, %c0_33] : memref<1x4xf32, #tpu.memory_space<vmem>>, vector<1x4xf32>
      %50 = vector.broadcast %49 : vector<1x4xf32> to vector<2x4xf32>
      %51 = arith.addf %48, %50 : vector<2x4xf32>
      %cst_34 = arith.constant dense<0.000000e+00> : vector<4xf32>
      %52 = vector.multi_reduction <add>, %51, %cst_34 [0] : vector<2x4xf32> to vector<4xf32>
      %53 = vector.shape_cast %52 : vector<4xf32> to vector<1x4xf32>
      %cst_35 = arith.constant 2.000000e+00 : f32
      %54 = vector.broadcast %cst_35 : f32 to vector<1x4xf32>
      %55 = arith.divf %53, %54 : vector<1x4xf32>
      %56 = vector.broadcast %55 : vector<1x4xf32> to vector<2x4xf32>
      %57 = arith.subf %51, %56 : vector<2x4xf32>
      %58 = vector.broadcast %55 : vector<1x4xf32> to vector<2x4xf32>
      %59 = arith.subf %51, %58 : vector<2x4xf32>
      %60 = arith.mulf %57, %59 : vector<2x4xf32>
      %cst_36 = arith.constant dense<0.000000e+00> : vector<4xf32>
      %61 = vector.multi_reduction <add>, %60, %cst_36 [0] : vector<2x4xf32> to vector<4xf32>
      %62 = vector.shape_cast %61 : vector<4xf32> to vector<1x4xf32>
      %cst_37 = arith.constant 2.000000e+00 : f32
      %63 = vector.broadcast %cst_37 : f32 to vector<1x4xf32>
      %64 = arith.divf %62, %63 : vector<1x4xf32>
      %65 = vector.broadcast %55 : vector<1x4xf32> to vector<2x4xf32>
      %66 = arith.subf %51, %65 : vector<2x4xf32>
      %cst_38 = arith.constant 9.99999974E-6 : f32
      %67 = vector.broadcast %cst_38 : f32 to vector<1x4xf32>
      %68 = arith.addf %64, %67 : vector<1x4xf32>
      %69 = math.rsqrt %68 : vector<1x4xf32>
      %70 = vector.broadcast %69 : vector<1x4xf32> to vector<2x4xf32>
      %71 = arith.mulf %66, %70 : vector<2x4xf32>
      %c0_39 = arith.constant 0 : index
      %c0_40 = arith.constant 0 : index
      %72 = vector.load %arg8[%c0_39, %c0_40] : memref<1x4xf32, #tpu.memory_space<vmem>>, vector<1x4xf32>
      %73 = vector.broadcast %72 : vector<1x4xf32> to vector<2x4xf32>
      %74 = arith.mulf %71, %73 : vector<2x4xf32>
      %c0_41 = arith.constant 0 : index
      %c0_42 = arith.constant 0 : index
      %75 = vector.load %arg9[%c0_41, %c0_42] : memref<1x4xf32, #tpu.memory_space<vmem>>, vector<1x4xf32>
      %76 = vector.broadcast %75 : vector<1x4xf32> to vector<2x4xf32>
      %77 = arith.addf %74, %76 : vector<2x4xf32>
      %cst_43 = arith.constant 0.000000e+00 : f32
      %78 = vector.broadcast %cst_43 : f32 to vector<2x4xf32>
      %79 = arith.maximumf %77, %78 : vector<2x4xf32>
      %c0_44 = arith.constant 0 : index
      %c0_45 = arith.constant 0 : index
      %80 = vector.load %arg10[%c0_44, %c0_45] : memref<4x4xf32, #tpu.memory_space<vmem>>, vector<4x4xf32>
      %cst_46 = arith.constant dense<0.000000e+00> : vector<2x4xf32>
      %81 = tpu.matmul %79, %80, %cst_46 {dimension_numbers = #tpu.dot_dimension_numbers<[1], [0], [0], [1], [0, 0, 1, 1], [], []>} : vector<2x4xf32>, vector<4x4xf32>, vector<2x4xf32> -> vector<2x4xf32>
      %c0_47 = arith.constant 0 : index
      %c0_48 = arith.constant 0 : index
      %82 = vector.load %arg11[%c0_47, %c0_48] : memref<1x4xf32, #tpu.memory_space<vmem>>, vector<1x4xf32>
      %83 = vector.broadcast %82 : vector<1x4xf32> to vector<2x4xf32>
      %84 = arith.addf %81, %83 : vector<2x4xf32>
      %cst_49 = arith.constant dense<0.000000e+00> : vector<4xf32>
      %85 = vector.multi_reduction <add>, %84, %cst_49 [0] : vector<2x4xf32> to vector<4xf32>
      %86 = vector.shape_cast %85 : vector<4xf32> to vector<1x4xf32>
      %cst_50 = arith.constant 2.000000e+00 : f32
      %87 = vector.broadcast %cst_50 : f32 to vector<1x4xf32>
      %88 = arith.divf %86, %87 : vector<1x4xf32>
      %89 = vector.broadcast %88 : vector<1x4xf32> to vector<2x4xf32>
      %90 = arith.subf %84, %89 : vector<2x4xf32>
      %91 = vector.broadcast %88 : vector<1x4xf32> to vector<2x4xf32>
      %92 = arith.subf %84, %91 : vector<2x4xf32>
      %93 = arith.mulf %90, %92 : vector<2x4xf32>
      %cst_51 = arith.constant dense<0.000000e+00> : vector<4xf32>
      %94 = vector.multi_reduction <add>, %93, %cst_51 [0] : vector<2x4xf32> to vector<4xf32>
      %95 = vector.shape_cast %94 : vector<4xf32> to vector<1x4xf32>
      %cst_52 = arith.constant 2.000000e+00 : f32
      %96 = vector.broadcast %cst_52 : f32 to vector<1x4xf32>
      %97 = arith.divf %95, %96 : vector<1x4xf32>
      %98 = vector.broadcast %88 : vector<1x4xf32> to vector<2x4xf32>
      %99 = arith.subf %84, %98 : vector<2x4xf32>
      %cst_53 = arith.constant 9.99999974E-6 : f32
      %100 = vector.broadcast %cst_53 : f32 to vector<1x4xf32>
      %101 = arith.addf %97, %100 : vector<1x4xf32>
      %102 = math.rsqrt %101 : vector<1x4xf32>
      %103 = vector.broadcast %102 : vector<1x4xf32> to vector<2x4xf32>
      %104 = arith.mulf %99, %103 : vector<2x4xf32>
      %c0_54 = arith.constant 0 : index
      %c0_55 = arith.constant 0 : index
      %105 = vector.load %arg12[%c0_54, %c0_55] : memref<1x4xf32, #tpu.memory_space<vmem>>, vector<1x4xf32>
      %106 = vector.broadcast %105 : vector<1x4xf32> to vector<2x4xf32>
      %107 = arith.mulf %104, %106 : vector<2x4xf32>
      %c0_56 = arith.constant 0 : index
      %c0_57 = arith.constant 0 : index
      %108 = vector.load %arg13[%c0_56, %c0_57] : memref<1x4xf32, #tpu.memory_space<vmem>>, vector<1x4xf32>
      %109 = vector.broadcast %108 : vector<1x4xf32> to vector<2x4xf32>
      %110 = arith.addf %107, %109 : vector<2x4xf32>
      %cst_58 = arith.constant 0.000000e+00 : f32
      %111 = vector.broadcast %cst_58 : f32 to vector<2x4xf32>
      %112 = arith.maximumf %110, %111 : vector<2x4xf32>
      %c0_59 = arith.constant 0 : index
      %c0_60 = arith.constant 0 : index
      %113 = vector.load %arg14[%c0_59, %c0_60] : memref<4x64xf32, #tpu.memory_space<vmem>>, vector<4x64xf32>
      %cst_61 = arith.constant dense<0.000000e+00> : vector<2x64xf32>
      %114 = tpu.matmul %112, %113, %cst_61 {dimension_numbers = #tpu.dot_dimension_numbers<[1], [0], [0], [1], [0, 0, 1, 1], [], []>} : vector<2x4xf32>, vector<4x64xf32>, vector<2x64xf32> -> vector<2x64xf32>
      %c0_62 = arith.constant 0 : index
      %c0_63 = arith.constant 0 : index
      %115 = vector.load %arg15[%c0_62, %c0_63] : memref<1x64xf32, #tpu.memory_space<vmem>>, vector<1x64xf32>
      %116 = vector.broadcast %115 : vector<1x64xf32> to vector<2x64xf32>
      %117 = arith.addf %114, %116 : vector<2x64xf32>
      %c0_64 = arith.constant 0 : index
      %c0_65 = arith.constant 0 : index
      %118 = vector.load %arg16[%c0_64, %c0_65] : memref<2x64xf32, #tpu.memory_space<vmem>>, vector<2x64xf32>
      tpu.vector_store %arg16[%c0_64, %c0_65], %117 {strides = array<i32>} : memref<2x64xf32, #tpu.memory_space<vmem>>, vector<2x64xf32>,
    } else {
    }
    return
  }
  func.func @transform_0(%arg0: i32) -> (i32, i32, i32) {
    %c0_i32 = arith.constant 0 : i32
    %c0_i32_0 = arith.constant 0 : i32
    %c0_i32_1 = arith.constant 0 : i32
    return %c0_i32, %c0_i32_0, %arg0 : i32, i32, i32
  }
  func.func @transform_1(%arg0: i32) -> (i32, i32) {
    %c0_i32 = arith.constant 0 : i32
    %c0_i32_0 = arith.constant 0 : i32
    %c0_i32_1 = arith.constant 0 : i32
    return %c0_i32, %c0_i32_0 : i32, i32
  }
  func.func @transform_2(%arg0: i32) -> (i32, i32) {
    %c0_i32 = arith.constant 0 : i32
    %c0_i32_0 = arith.constant 0 : i32
    %c0_i32_1 = arith.constant 0 : i32
    return %c0_i32, %c0_i32_0 : i32, i32
  }
  func.func @transform_3(%arg0: i32) -> (i32, i32) {
    %c0_i32 = arith.constant 0 : i32
    %c0_i32_0 = arith.constant 0 : i32
    %c0_i32_1 = arith.constant 0 : i32
    return %c0_i32, %c0_i32_0 : i32, i32
  }
  func.func @transform_4(%arg0: i32) -> (i32, i32) {
    %c0_i32 = arith.constant 0 : i32
    %c0_i32_0 = arith.constant 0 : i32
    %c0_i32_1 = arith.constant 0 : i32
    return %c0_i32, %c0_i32_0 : i32, i32
  }
  func.func @transform_5(%arg0: i32) -> (i32, i32) {
    %c0_i32 = arith.constant 0 : i32
    %c0_i32_0 = arith.constant 0 : i32
    %c0_i32_1 = arith.constant 0 : i32
    return %c0_i32, %c0_i32_0 : i32, i32
  }
  func.func @transform_6(%arg0: i32) -> (i32, i32) {
    %c0_i32 = arith.constant 0 : i32
    %c0_i32_0 = arith.constant 0 : i32
    %c0_i32_1 = arith.constant 0 : i32
    return %c0_i32, %c0_i32_0 : i32, i32
  }
  func.func @transform_7(%arg0: i32) -> (i32, i32) {
    %c0_i32 = arith.constant 0 : i32
    %c0_i32_0 = arith.constant 0 : i32
    %c0_i32_1 = arith.constant 0 : i32
    return %c0_i32, %c0_i32_0 : i32, i32
  }
  func.func @transform_8(%arg0: i32) -> (i32, i32) {
    %c0_i32 = arith.constant 0 : i32
    %c0_i32_0 = arith.constant 0 : i32
    %c0_i32_1 = arith.constant 0 : i32
    return %c0_i32, %c0_i32_0 : i32, i32
  }
  func.func @transform_9(%arg0: i32) -> (i32, i32) {
    %c0_i32 = arith.constant 0 : i32
    %c0_i32_0 = arith.constant 0 : i32
    %c0_i32_1 = arith.constant 0 : i32
    return %c0_i32, %c0_i32_0 : i32, i32
  }
  func.func @transform_10(%arg0: i32) -> (i32, i32) {
    %c0_i32 = arith.constant 0 : i32
    %c0_i32_0 = arith.constant 0 : i32
    %c0_i32_1 = arith.constant 0 : i32
    return %c0_i32, %c0_i32_0 : i32, i32
  }
  func.func @transform_11(%arg0: i32) -> (i32, i32) {
    %c0_i32 = arith.constant 0 : i32
    %c0_i32_0 = arith.constant 0 : i32
    %c0_i32_1 = arith.constant 0 : i32
    return %c0_i32, %c0_i32_0 : i32, i32
  }
  func.func @transform_12(%arg0: i32) -> (i32, i32) {
    %c0_i32 = arith.constant 0 : i32
    %c0_i32_0 = arith.constant 0 : i32
    %c0_i32_1 = arith.constant 0 : i32
    return %c0_i32, %c0_i32_0 : i32, i32
  }
  func.func @transform_13(%arg0: i32) -> (i32, i32) {
    %c0_i32 = arith.constant 0 : i32
    %c0_i32_0 = arith.constant 0 : i32
    %c0_i32_1 = arith.constant 0 : i32
    return %c0_i32, %c0_i32_0 : i32, i32
  }
  func.func @transform_14(%arg0: i32) -> (i32, i32) {
    %c0_i32 = arith.constant 0 : i32
    %c0_i32_0 = arith.constant 0 : i32
    %c0_i32_1 = arith.constant 0 : i32
    return %c0_i32, %c0_i32_0 : i32, i32
  }
  func.func @transform_15(%arg0: i32) -> (i32, i32) {
    %c0_i32 = arith.constant 0 : i32
    %c0_i32_0 = arith.constant 0 : i32
    %c0_i32_1 = arith.constant 0 : i32
    return %c0_i32, %c0_i32_0 : i32, i32
  }
}

</mosaic_0001>

<bundles_post_ra>
// kernel: tpu_custom_call.1
= control target key start
LH: loop header
LB: loop body
LE: loop exit
PB: predicated region body
PF: predicated region fallthrough
CT: control target
= control target key end

     0   :  { %20 = vsyncpa [#allocation4], 0  ;;  %s1990_s0 = inlined_call_operand.hbm [shape: f32[2,64,1024], index: 0, kind: input, shape index: {}]   ;;  %s1991_s1 = inlined_call_operand.vmem [shape: f32[64,4], index: 1, kind: input, shape index: {}]   ;;  %s1992_s2 = inlined_call_operand.vmem [shape: f32[1,4], index: 2, kind: input, shape index: {}]   ;;  %s1993_s3 = inlined_call_operand.vmem [shape: f32[1,4], index: 3, kind: input, shape index: {}]   ;;  %s1994_s4 = inlined_call_operand.vmem [shape: f32[1,4], index: 4, kind: input, shape index: {}]   ;;  %s1995_s5 = inlined_call_operand.vmem [shape: f32[4,4], index: 5, kind: input, shape index: {}]   ;;  %s1996_s6 = inlined_call_operand.vmem [shape: f32[1,4], index: 6, kind: input, shape index: {}]   ;;  %s1997_s7 = inlined_call_operand.vmem [shape: f32[1,4], index: 7, kind: input, shape index: {}]   ;;  %s1998_s8 = inlined_call_operand.vmem [shape: f32[1,4], index: 8, kind: input, shape index: {}]   ;;  %s1999_s9 = inlined_call_operand.vmem [shape: f32[4,4], index: 9, kind: input, shape index: {}]   ;;  %s2000_s10 = inlined_call_operand.vmem [shape: f32[1,4], index: 10, kind: input, shape index: {}]   ;;  %s2001_s11 = inlined_call_operand.vmem [shape: f32[1,4], index: 11, kind: input, shape index: {}]   ;;  %s2002_s12 = inlined_call_operand.vmem [shape: f32[1,4], index: 12, kind: input, shape index: {}]   ;;  %s2003_s13 = inlined_call_operand.vmem [shape: f32[4,64], index: 13, kind: input, shape index: {}]   ;;  %s2004_s14 = inlined_call_operand.vmem [shape: f32[1,64], index: 14, kind: input, shape index: {}]   ;;  %s2005_s15 = inlined_call_operand.hbm [shape: f32[2,64], index: 15, kind: output, shape index: {}]  }
   0x1   :  { %22 = vsyncpa [#allocation4 + $0x1], 0 }
   0x2   :  { %23 = vsyncpa [#allocation5], 0  ;;  %s1732_s18 = smov 0   ;;  %s1734_s19 = smov 0  }
   0x3   :  { %s1736_s20 = smov 0   ;;  %s1738_s21 = smov 0  }
   0x4 LB: > { %2009 = sst [smem:[#allocation9_spill]] %s1637_s20  ;;  %s1751_s22 = sadd.s32 4294967295, %s1641_s21   ;;  %s1641_s21 = sphi %s1738_s21, %s2014_s21   ;;  %s1637_s20 = sphi %s1736_s20, %s2016_s20   ;;  %s1633_s19 = sphi %s1734_s19, %s2018_s19   ;;  %s1629_s18 = sphi %s1732_s18, %s2017_s18  }
   0x5   : > { %s1754_s23 = sadd.s32 1, %s1641_s21   ;;  %s36_s25 = sadd.s32 1, %s1637_s20 }
   0x6   : > { %2010 = sst [smem:[#allocation10_spill]] %s1754_s23  ;;  %s33_s24 = ssub.s32 %s1641_s21, %s1754_s23 }
   0x7   : > { %p34_p0 = scmp.eq.s32.totalorder %s33_s24, 0  ;;  %p43_p1 = scmp.ne.s32.totalorder %s1637_s20, %s1633_s19 }
   0x8   : > { %p44_p2 = scmp.eq.s32.totalorder %s1641_s21, 0  ;;  %p49_p3 = scmp.ne.s32.totalorder %s1633_s19, %s1629_s18 }
   0x9   : > { %s1764_s26 = scalar_select %p34_p0, %s1637_s20, %s36_s25  }
   0xa   : > { %p45_p4 = por %p44_p2, %p43_p1  ;;  %p50_p5 = scmp.eq.s32.totalorder %s1751_s22, 0 }
   0xb   : > { %2011 = sst [smem:[#allocation11_spill]] %s1764_s26  ;;  %p1498_p6 = scmp.lt.s32.totalorder %s1641_s21, 4 }
   0xc   : > { %p1768_p7 = por %p50_p5, %p49_p3  ;;  %s430_s28 = sand.u32 1, %s1637_s20  }
   0xd   : > { %s1398_s29 = sshll.u32 %s430_s28, 8  ;;  %s1426_s30 = sshll.u32 %s1641_s21, 8 }
   0xe   : > { %s1777_s23 = scalar_lea.hbm %s1990_s0, %s1426_s30  ;;  %s434_s18 = scalar_lea.vmem [#allocation3], %s1398_s29 }
   0xf   : > { %s441_s24 = sshll.u32 %s434_s18, 4  ;;  %p1781_p8 = pnand %p1498_p6, %p45_p4  ;;  %s1779_s24 = int_to_ptr.vmem [resolvable:$true] %s441_s24 }
  0x10   : > { %s1785_s26 = scalar_lea.sflag [#allocation4], %s430_s28  ;;  %s1547_s20 = scalar_lea.hbm %s1777_s23, 4096 }
  0x11   : > { %p1548_p9 = scmp.ne.s32.totalorder %s1777_s23, %s1547_s20  ;;  %p1549_p10 = pneg %p1781_p8 }
  0x12   : > { %s1552_s16 = scalar_lea.hbm %s1990_s0, 16384  ;;  %p1553_p13 = scmp.lt.u32.totalorder %s1777_s23, %s1990_s0 }
  0x13   : > { %p1550_p11 = pnand %p1549_p10, %p1548_p9  ;;  %p1554_p0 = scmp.lt.u32.totalorder %s1552_s16, %s1547_s20 }
  0x14   : > { %p1556_p2 = scmp.lt.u32.totalorder %s1547_s20, %s1777_s23 }
  0x15   : > { %p1551_p12 = pneg %p1550_p11  ;;  %p1555_p1 = por %p1554_p0, %p1553_p13 }
  0x17   : > { %p1557_p3 = por %p1556_p2, %p1555_p1 }
  0x19   : > { %p1558_p4 = pnand %p1557_p3, %p1551_p12 }
  0x1b   : > { %1561 = shalt.err (!%p1558_p4)
}
  0x1c   : > { %s1562_s28 = scalar_lea.vmem %s1779_s24, 4096  ;;  %s1643_s29 = smov [#allocation3]  }
  0x1d   : > { %p1563_p5 = scmp.ne.s32.totalorder %s1779_s24, %s1562_s28  ;;  %s1567_s30 = sshll.u32 %s1643_s29, 4  ;;  %s1568_s30 = int_to_ptr.vmem [resolvable:$false] %s1567_s30 }
  0x1e   : > { %s1569_s17 = scalar_lea.vmem %s1568_s30, 8192  ;;  %p1570_p11 = scmp.lt.s32.totalorder %s1779_s24, %s1568_s30 }
  0x1f   : > { %p1565_p6 = pnand %p1563_p5, %p1549_p10  ;;  %p1571_p13 = scmp.lt.s32.totalorder %s1569_s17, %s1562_s28 }
  0x21   : > { %p1566_p9 = pneg %p1565_p6  ;;  %p1572_p0 = por %p1571_p13, %p1570_p11 }
  0x23   : > { %p1573_p1 = pnand %p1572_p0, %p1566_p9 }
  0x25   : > { %1576 = shalt.err (!%p1573_p1)
}
  0x26   : > { %s1644_s20 = smov 1024   ;;  %s1645_s16 = smov 256  }
  0x27   : > { %s1646_s18 = smov 16   ;;  %p1401_p10 = scmp.ge.s32.totalorder %s1641_s21, 1 }
  0x28   : > { %1497 = dma.hbm_to_vmem [thread:$0]  (!%p1781_p8), %s1777_s23, 4096, %s1779_s24, %s1785_s26, %s1644_s20, %s1645_s16, %s1646_s18  }
  0x29   : > { %p449_p12 = scmp.lt.s32.totalorder %s1641_s21, 5 }
  0x2b   : > { %p450_p2 = pnand %p1401_p10, %p449_p12 }
  0x2c   : > { %s455_s28 = sand.u32 (!%p450_p2), 1, %s1633_s19  }
  0x2d   : > { %453 = sbr.rel (%p450_p2) target bundleno = 1322 (0x52a), region = 80  ;;  %s1402_s29 = sshll.u32 (!%p450_p2), %s455_s28, 8 }
  0x2e   : > { %s456_s30 = scalar_lea.sflag (!%p450_p2), [#allocation4], %s455_s28  ;;  %s1816_s17 = scalar_lea.vmem (!%p450_p2), [#allocation3], %s1402_s29 }
  0x34   : > { %1620 = dma.done.wait (%p1768_p7), %s456_s30, 4096  }
  0x35   : > { %1622 = vsyncadd (%p1768_p7), %s456_s30, 4294963200  ;;  %p1403_p3 = scmp.ne.s32.totalorder %s1751_s22, 0 }
  0x36   : > { %v1647_v0 = vmov (!%p1403_p3), 0.0  }
  0x37   : > { %505 = sbr.rel (%p1403_p3) target bundleno = 71 (0x47), region = 88  ;;  %506 = vst [vmem:[#allocation2] sm:$0xff] (!%p1403_p3), %v1647_v0  ;;  %507 = vst [vmem:[#allocation2 + $0x8] sm:$0xff] (!%p1403_p3), %v1647_v0 }
  0x38   : > { %508 = vst [vmem:[#allocation2 + $0x10] sm:$0xff] (!%p1403_p3), %v1647_v0  ;;  %509 = vst [vmem:[#allocation2 + $0x18] sm:$0xff] (!%p1403_p3), %v1647_v0 }
  0x39   : > { %510 = vst [vmem:[#allocation2 + $0x20] sm:$0xff] (!%p1403_p3), %v1647_v0  ;;  %511 = vst [vmem:[#allocation2 + $0x28] sm:$0xff] (!%p1403_p3), %v1647_v0 }
  0x3a   : > { %512 = vst [vmem:[#allocation2 + $0x30] sm:$0xff] (!%p1403_p3), %v1647_v0  ;;  %513 = vst [vmem:[#allocation2 + $0x38] sm:$0xff] (!%p1403_p3), %v1647_v0 }
  0x3b   : > { %514 = vst [vmem:[#allocation2 + $0x40] sm:$0xff] (!%p1403_p3), %v1647_v0  ;;  %515 = vst [vmem:[#allocation2 + $0x48] sm:$0xff] (!%p1403_p3), %v1647_v0 }
  0x3c   : > { %516 = vst [vmem:[#allocation2 + $0x50] sm:$0xff] (!%p1403_p3), %v1647_v0  ;;  %517 = vst [vmem:[#allocation2 + $0x58] sm:$0xff] (!%p1403_p3), %v1647_v0 }
  0x3d   : > { %518 = vst [vmem:[#allocation2 + $0x60] sm:$0xff] (!%p1403_p3), %v1647_v0  ;;  %519 = vst [vmem:[#allocation2 + $0x68] sm:$0xff] (!%p1403_p3), %v1647_v0 }
  0x3e   : > { %520 = vst [vmem:[#allocation2 + $0x70] sm:$0xff] %v1647_v0  ;;  %521 = vst [vmem:[#allocation2 + $0x78] sm:$0xff] %v1647_v0 }
  0x3f   : > { %522 = vst [vmem:[#allocation2 + $0x80] sm:$0xff] %v1647_v0  ;;  %523 = vst [vmem:[#allocation2 + $0x88] sm:$0xff] %v1647_v0 }
  0x40   : > { %524 = vst [vmem:[#allocation2 + $0x90] sm:$0xff] %v1647_v0  ;;  %525 = vst [vmem:[#allocation2 + $0x98] sm:$0xff] %v1647_v0 }
  0x41   : > { %526 = vst [vmem:[#allocation2 + $0xa0] sm:$0xff] %v1647_v0  ;;  %527 = vst [vmem:[#allocation2 + $0xa8] sm:$0xff] %v1647_v0 }
  0x42   : > { %528 = vst [vmem:[#allocation2 + $0xb0] sm:$0xff] %v1647_v0  ;;  %529 = vst [vmem:[#allocation2 + $0xb8] sm:$0xff] %v1647_v0 }
  0x43   : > { %530 = vst [vmem:[#allocation2 + $0xc0] sm:$0xff] %v1647_v0  ;;  %531 = vst [vmem:[#allocation2 + $0xc8] sm:$0xff] %v1647_v0 }
  0x44   : > { %532 = vst [vmem:[#allocation2 + $0xd0] sm:$0xff] %v1647_v0  ;;  %533 = vst [vmem:[#allocation2 + $0xd8] sm:$0xff] %v1647_v0 }
  0x45   : > { %534 = vst [vmem:[#allocation2 + $0xe0] sm:$0xff] %v1647_v0  ;;  %535 = vst [vmem:[#allocation2 + $0xe8] sm:$0xff] %v1647_v0 }
  0x46   : > { %536 = vst [vmem:[#allocation2 + $0xf0] sm:$0xff] %v1647_v0  ;;  %537 = vst [vmem:[#allocation2 + $0xf8] sm:$0xff] %v1647_v0 }
  0x47 PF: > { %v538_v1 = vld [vmem:[%s1816_s17] sm:$0xff]  ;;  %v539_v3 = vld [vmem:[%s1816_s17 + $0x8] sm:$0xff]  ;;  %v540_v6 = vld [vmem:[%s1816_s17 + $0x10] sm:$0xff]  ;;  %p1404_p7 = scmp.ne.s32.totalorder %s1751_s22, 3 }
  0x48   : > { %v570_v2 = vld [vmem:[#allocation2] sm:$0xff]  ;;  %v571_v5 = vld [vmem:[#allocation2 + $0x8] sm:$0xff]  ;;  %v572_v7 = vld [vmem:[#allocation2 + $0x10] sm:$0xff]  ;;  %vm1649_vm0 = vmmov (!%p1404_p7), 0   ;;  %vm808_vm1 = vcmask (!%p1404_p7), 130112   ;;  %vm815_vm2 = vcmask (!%p1404_p7), 195712  }
  0x49   : > { %v602_v4 = vadd.f32 %v570_v2, %v538_v1  ;;  %v603_v8 = vadd.f32 %v571_v5, %v539_v3  ;;  %v604_v9 = vadd.f32 %v572_v7, %v540_v6  ;;  %v541_v10 = vld [vmem:[%s1816_s17 + $0x18] sm:$0xff]  ;;  %v542_v12 = vld [vmem:[%s1816_s17 + $0x20] sm:$0xff]  ;;  %v543_v15 = vld [vmem:[%s1816_s17 + $0x28] sm:$0xff]  ;;  %vm822_vm3 = vcmask (!%p1404_p7), 261312  }
  0x4a   : > { %v573_v11 = vld [vmem:[#allocation2 + $0x18] sm:$0xff]  ;;  %v574_v14 = vld [vmem:[#allocation2 + $0x20] sm:$0xff]  ;;  %v575_v16 = vld [vmem:[#allocation2 + $0x28] sm:$0xff]  ;;  %vm829_vm4 = vcmask (!%p1404_p7), 326912   ;;  %vm836_vm5 = vcmask (!%p1404_p7), 392512   ;;  %vm843_vm6 = vcmask (!%p1404_p7), 458112  }
  0x4b   : > { %634 = vst [vmem:[#allocation2] sm:$0xff] %v602_v4  ;;  %v605_v13 = vadd.f32 %v573_v11, %v541_v10  ;;  %635 = vst [vmem:[#allocation2 + $0x8] sm:$0xff] %v603_v8  ;;  %v606_v17 = vadd.f32 %v574_v14, %v542_v12  ;;  %v607_v18 = vadd.f32 %v575_v16, %v543_v15  ;;  %v544_v19 = vld [vmem:[%s1816_s17 + $0x30] sm:$0xff]  ;;  %v545_v21 = vld [vmem:[%s1816_s17 + $0x38] sm:$0xff]  ;;  %vm850_vm7 = vcmask (!%p1404_p7), 523712  }
  0x4c   : > { %636 = vst [vmem:[#allocation2 + $0x10] sm:$0xff] %v604_v9  ;;  %v576_v20 = vld [vmem:[#allocation2 + $0x30] sm:$0xff]  ;;  %v577_v23 = vld [vmem:[#allocation2 + $0x38] sm:$0xff]  ;;  %v546_v24 = vld [vmem:[%s1816_s17 + $0x40] sm:$0xff]  ;;  %vm891_vm8 = vcmask (!%p1404_p7), 1041409   ;;  %vm893_vm9 = vcmask (!%p1404_p7), 523264  }
  0x4d   : > { %637 = vst [vmem:[#allocation2 + $0x18] sm:$0xff] %v605_v13  ;;  %v608_v22 = vadd.f32 %v576_v20, %v544_v19  ;;  %v578_v25 = vld [vmem:[#allocation2 + $0x40] sm:$0xff]  ;;  %638 = vst [vmem:[#allocation2 + $0x20] sm:$0xff] %v606_v17  ;;  %v609_v26 = vadd.f32 %v577_v23, %v545_v21  ;;  %v547_v28 = vld [vmem:[%s1816_s17 + $0x48] sm:$0xff]  ;;  %vm1018_vm10 = vcmask (!%p1404_p7), 1043456   ;;  %vm966_vm11 = vcmask (!%p1404_p7), 25600  }
  0x4e   : > { %639 = vst [vmem:[#allocation2 + $0x28] sm:$0xff] %v607_v18  ;;  %v610_v27 = vadd.f32 %v578_v25, %v546_v24  ;;  %v579_v29 = vld [vmem:[#allocation2 + $0x48] sm:$0xff]  ;;  %v548_v30 = vld [vmem:[%s1816_s17 + $0x50] sm:$0xff]  ;;  %v549_v33 = vld [vmem:[%s1816_s17 + $0x58] sm:$0xff]  ;;  %vm1014_vm12 = vcmask (!%p1404_p7), 31744   ;;  %vm1336_vm13 = vcmask (!%p1404_p7), 517120  }
  0x4f   : > { %640 = vst [vmem:[#allocation2 + $0x30] sm:$0xff] %v608_v22  ;;  %v611_v31 = vadd.f32 %v579_v29, %v547_v28  ;;  %v580_v32 = vld [vmem:[#allocation2 + $0x50] sm:$0xff]  ;;  %v581_v34 = vld [vmem:[#allocation2 + $0x58] sm:$0xff]  ;;  %641 = vst [vmem:[#allocation2 + $0x38] sm:$0xff] %v609_v26 }
  0x50   : > { %642 = vst [vmem:[#allocation2 + $0x40] sm:$0xff] %v610_v27  ;;  %v612_v35 = vadd.f32 %v580_v32, %v548_v30  ;;  %v613_v36 = vadd.f32 %v581_v34, %v549_v33  ;;  %v550_v37 = vld [vmem:[%s1816_s17 + $0x60] sm:$0xff]  ;;  %v551_v39 = vld [vmem:[%s1816_s17 + $0x68] sm:$0xff]  ;;  %v552_v42 = vld [vmem:[%s1816_s17 + $0x70] sm:$0xff] }
  0x51   : > { %v582_v38 = vld [vmem:[#allocation2 + $0x60] sm:$0xff]  ;;  %643 = vst [vmem:[#allocation2 + $0x48] sm:$0xff] %v611_v31  ;;  %v583_v41 = vld [vmem:[#allocation2 + $0x68] sm:$0xff]  ;;  %v584_v43 = vld [vmem:[#allocation2 + $0x70] sm:$0xff] }
  0x52   : > { %v614_v40 = vadd.f32 %v582_v38, %v550_v37  ;;  %644 = vst [vmem:[#allocation2 + $0x50] sm:$0xff] %v612_v35  ;;  %645 = vst [vmem:[#allocation2 + $0x58] sm:$0xff] %v613_v36  ;;  %v615_v44 = vadd.f32 %v583_v41, %v551_v39  ;;  %v616_v45 = vadd.f32 %v584_v43, %v552_v42  ;;  %v553_v46 = vld [vmem:[%s1816_s17 + $0x78] sm:$0xff]  ;;  %v554_v48 = vld [vmem:[%s1816_s17 + $0x80] sm:$0xff] }
  0x53   : > { %v585_v47 = vld [vmem:[#allocation2 + $0x78] sm:$0xff]  ;;  %v586_v50 = vld [vmem:[#allocation2 + $0x80] sm:$0xff]  ;;  %v555_v51 = vld [vmem:[%s1816_s17 + $0x88] sm:$0xff] }
  0x54   : > { %646 = vst [vmem:[#allocation2 + $0x60] sm:$0xff] %v614_v40  ;;  %v617_v49 = vadd.f32 %v585_v47, %v553_v46  ;;  %v587_v52 = vld [vmem:[#allocation2 + $0x88] sm:$0xff]  ;;  %647 = vst [vmem:[#allocation2 + $0x68] sm:$0xff] %v615_v44  ;;  %v618_v53 = vadd.f32 %v586_v50, %v554_v48  ;;  %v556_v55 = vld [vmem:[%s1816_s17 + $0x90] sm:$0xff] }
  0x55   : > { %648 = vst [vmem:[#allocation2 + $0x70] sm:$0xff] %v616_v45  ;;  %v619_v54 = vadd.f32 %v587_v52, %v555_v51  ;;  %v588_v56 = vld [vmem:[#allocation2 + $0x90] sm:$0xff]  ;;  %v557_v57 = vld [vmem:[%s1816_s17 + $0x98] sm:$0xff]  ;;  %v558_v60 = vld [vmem:[%s1816_s17 + $0xa0] sm:$0xff] }
  0x56   : > { %649 = vst [vmem:[#allocation2 + $0x78] sm:$0xff] %v617_v49  ;;  %v620_v58 = vadd.f32 %v588_v56, %v556_v55  ;;  %v589_v59 = vld [vmem:[#allocation2 + $0x98] sm:$0xff]  ;;  %v590_v61 = vld [vmem:[#allocation2 + $0xa0] sm:$0xff]  ;;  %650 = vst [vmem:[#allocation2 + $0x80] sm:$0xff] %v618_v53 }
  0x57   : > { %651 = vst [vmem:[#allocation2 + $0x88] sm:$0xff] %v619_v54  ;;  %v621_v62 = vadd.f32 %v589_v59, %v557_v57  ;;  %v622_v63 = vadd.f32 %v590_v61, %v558_v60  ;;  %v559_v0 = vld [vmem:[%s1816_s17 + $0xa8] sm:$0xff]  ;;  %v560_v2 = vld [vmem:[%s1816_s17 + $0xb0] sm:$0xff]  ;;  %v561_v5 = vld [vmem:[%s1816_s17 + $0xb8] sm:$0xff] }
  0x58   : > { %v591_v1 = vld [vmem:[#allocation2 + $0xa8] sm:$0xff]  ;;  %652 = vst [vmem:[#allocation2 + $0x90] sm:$0xff] %v620_v58  ;;  %v592_v4 = vld [vmem:[#allocation2 + $0xb0] sm:$0xff]  ;;  %v593_v6 = vld [vmem:[#allocation2 + $0xb8] sm:$0xff] }
  0x59   : > { %v623_v3 = vadd.f32 %v591_v1, %v559_v0  ;;  %653 = vst [vmem:[#allocation2 + $0x98] sm:$0xff] %v621_v62  ;;  %654 = vst [vmem:[#allocation2 + $0xa0] sm:$0xff] %v622_v63  ;;  %v624_v7 = vadd.f32 %v592_v4, %v560_v2  ;;  %v625_v8 = vadd.f32 %v593_v6, %v561_v5  ;;  %v562_v9 = vld [vmem:[%s1816_s17 + $0xc0] sm:$0xff]  ;;  %v563_v11 = vld [vmem:[%s1816_s17 + $0xc8] sm:$0xff] }
  0x5a   : > { %v594_v10 = vld [vmem:[#allocation2 + $0xc0] sm:$0xff]  ;;  %v595_v13 = vld [vmem:[#allocation2 + $0xc8] sm:$0xff]  ;;  %v564_v14 = vld [vmem:[%s1816_s17 + $0xd0] sm:$0xff] }
  0x5b   : > { %655 = vst [vmem:[#allocation2 + $0xa8] sm:$0xff] %v623_v3  ;;  %v626_v12 = vadd.f32 %v594_v10, %v562_v9  ;;  %v596_v15 = vld [vmem:[#allocation2 + $0xd0] sm:$0xff]  ;;  %656 = vst [vmem:[#allocation2 + $0xb0] sm:$0xff] %v624_v7  ;;  %v627_v16 = vadd.f32 %v595_v13, %v563_v11  ;;  %v565_v18 = vld [vmem:[%s1816_s17 + $0xd8] sm:$0xff] }
  0x5c   : > { %657 = vst [vmem:[#allocation2 + $0xb8] sm:$0xff] %v625_v8  ;;  %v628_v17 = vadd.f32 %v596_v15, %v564_v14  ;;  %v597_v19 = vld [vmem:[#allocation2 + $0xd8] sm:$0xff]  ;;  %v566_v20 = vld [vmem:[%s1816_s17 + $0xe0] sm:$0xff]  ;;  %v567_v23 = vld [vmem:[%s1816_s17 + $0xe8] sm:$0xff]  ;;  %669 = sbr.rel (%p1404_p7) target bundleno = 1297 (0x511), region = 92 }
  0x5d   : > { %658 = vst [vmem:[#allocation2 + $0xc0] sm:$0xff] %v626_v12  ;;  %v629_v21 = vadd.f32 %v597_v19, %v565_v18  ;;  %v598_v22 = vld [vmem:[#allocation2 + $0xe0] sm:$0xff]  ;;  %v599_v24 = vld [vmem:[#allocation2 + $0xe8] sm:$0xff]  ;;  %659 = vst [vmem:[#allocation2 + $0xc8] sm:$0xff] %v627_v16 }
  0x5e   : > { %660 = vst [vmem:[#allocation2 + $0xd0] sm:$0xff] %v628_v17  ;;  %v630_v25 = vadd.f32 %v598_v22, %v566_v20  ;;  %v631_v26 = vadd.f32 %v599_v24, %v567_v23  ;;  %v568_v27 = vld [vmem:[%s1816_s17 + $0xf0] sm:$0xff]  ;;  %v569_v29 = vld [vmem:[%s1816_s17 + $0xf8] sm:$0xff]  ;;  %v686_v33 = vld [vmem:[#allocation2 + $0x80] sm:$0xff] (!%p1404_p7)  ;;  %v1648_v20 = vmov (!%p1404_p7), 0.0|0.0  }
  0x5f   : > { %v600_v28 = vld [vmem:[#allocation2 + $0xf0] sm:$0xff]  ;;  %661 = vst [vmem:[#allocation2 + $0xd8] sm:$0xff] %v629_v21  ;;  %v601_v31 = vld [vmem:[#allocation2 + $0xf8] sm:$0xff]  ;;  %v687_v34 = vld [vmem:[#allocation2 + $0x88] sm:$0xff] (!%p1404_p7)  ;;  %1476 = vmatprep.subr.bf16.mxu0 (!%p1404_p7), %v1648_v20 }
  0x60   : > { %v632_v30 = vadd.f32 %v600_v28, %v568_v27  ;;  %662 = vst [vmem:[#allocation2 + $0xe0] sm:$0xff] %v630_v25  ;;  %663 = vst [vmem:[#allocation2 + $0xe8] sm:$0xff] %v631_v26  ;;  %v633_v32 = vadd.f32 %v601_v31, %v569_v29  ;;  %v670_v35 = vld [vmem:[#allocation2] sm:$0xff] (!%p1404_p7)  ;;  %v726_v36 = vadd.f32 (!%p1404_p7), %v687_v34, %v686_v33  ;;  %v671_v37 = vld [vmem:[#allocation2 + $0x8] sm:$0xff] (!%p1404_p7) }
  0x61   : > { %v688_v38 = vld [vmem:[#allocation2 + $0x90] sm:$0xff] (!%p1404_p7)  ;;  %v689_v39 = vld [vmem:[#allocation2 + $0x98] sm:$0xff] (!%p1404_p7)  ;;  %v702_v40 = vadd.f32 (!%p1404_p7), %v671_v37, %v670_v35  ;;  %v690_v45 = vld [vmem:[#allocation2 + $0xa0] sm:$0xff] (!%p1404_p7)  ;;  %v797_v35 = vlaneseq (!%p1404_p7) }
  0x62   : > { %664 = vst [vmem:[#allocation2 + $0xf0] sm:$0xff] %v632_v30  ;;  %665 = vst [vmem:[#allocation2 + $0xf8] sm:$0xff] %v633_v32  ;;  %v672_v41 = vld [vmem:[#allocation2 + $0x10] sm:$0xff] (!%p1404_p7)  ;;  %v673_v42 = vld [vmem:[#allocation2 + $0x18] sm:$0xff] (!%p1404_p7)  ;;  %727 = vadd.xlane.f32.xlu1 (!%p1404_p7), %v726_v36  ;;  %v729_v43 = vadd.f32 (!%p1404_p7), %v689_v39, %v688_v38  ;;  %v1650_v30 = vmov (!%p1404_p7), 0.0  }
  0x63   : > { %703 = vadd.xlane.f32.xlu0 %v702_v40  ;;  %v705_v44 = vadd.f32 %v673_v42, %v672_v41  ;;  %v691_v46 = vld [vmem:[#allocation2 + $0xa8] sm:$0xff]  ;;  %v674_v47 = vld [vmem:[#allocation2 + $0x20] sm:$0xff]  ;;  %v692_v51 = vld [vmem:[#allocation2 + $0xb0] sm:$0xff]  ;;  %1458 = vmatprep.mubr.msk.f32.mxu0 %vm1649_vm0, %v1650_v30  ;;  %v798_v38 = vand.u32 127, %v797_v35  ;;  %v800_v40 = vshrl.u32 %v797_v35, 7 }
  0x64   : > { %v675_v48 = vld [vmem:[#allocation2 + $0x28] sm:$0xff]  ;;  %v732_v49 = vadd.f32 %v691_v46, %v690_v45  ;;  %v693_v52 = vld [vmem:[#allocation2 + $0xb8] sm:$0xff]  ;;  %v676_v53 = vld [vmem:[#allocation2 + $0x30] sm:$0xff]  ;;  %1461 = vmatprep.subr.mxu1 %v1650_v30  ;;  %1463 = vmatprep.mubr.msk.f32.mxu1 %vm1649_vm0, %v1650_v30 }
  0x65   : > { %v708_v50 = vadd.f32 %v675_v48, %v674_v47  ;;  %v677_v54 = vld [vmem:[#allocation2 + $0x38] sm:$0xff]  ;;  %v735_v55 = vadd.f32 %v693_v52, %v692_v51  ;;  %v694_v57 = vld [vmem:[#allocation2 + $0xc0] sm:$0xff]  ;;  %v695_v58 = vld [vmem:[#allocation2 + $0xc8] sm:$0xff]  ;;  %v803_v42 = vadd.s32 4294967288, %v798_v38  ;;  %v824_v45 = vadd.s32 4294967264, %v798_v38 }
  0x66   : > { %730 = vadd.xlane.f32.xlu1 %v729_v43  ;;  %v711_v56 = vadd.f32 %v677_v54, %v676_v53  ;;  %v678_v59 = vld [vmem:[#allocation2 + $0x40] sm:$0xff]  ;;  %v679_v60 = vld [vmem:[#allocation2 + $0x48] sm:$0xff]  ;;  %v738_v61 = vadd.f32 %v695_v58, %v694_v57  ;;  %v696_v63 = vld [vmem:[#allocation2 + $0xd0] sm:$0xff]  ;;  %v810_v43 = vadd.s32 4294967280, %v798_v38  ;;  %v831_v47 = vadd.s32 4294967256, %v798_v38 }
  0x67   : > { %706 = vadd.xlane.f32.xlu0 %v705_v44  ;;  %v714_v62 = vadd.f32 %v679_v60, %v678_v59  ;;  %v697_v0 = vld [vmem:[#allocation2 + $0xd8] sm:$0xff]  ;;  %v680_v1 = vld [vmem:[#allocation2 + $0x50] sm:$0xff]  ;;  %v698_v5 = vld [vmem:[#allocation2 + $0xe0] sm:$0xff]  ;;  %v817_v44 = vadd.s32 4294967272, %v798_v38  ;;  %v801_v48 = vsub.s32 %v798_v38, %v800_v40  ;;  %v838_v52 = vadd.s32 4294967248, %v798_v38 }
  0x68   : > { %v681_v2 = vld [vmem:[#allocation2 + $0x58] sm:$0xff]  ;;  %v741_v3 = vadd.f32 %v697_v0, %v696_v63  ;;  %v699_v6 = vld [vmem:[#allocation2 + $0xe8] sm:$0xff]  ;;  %v682_v7 = vld [vmem:[#allocation2 + $0x60] sm:$0xff]  ;;  %v813_v51 = vsub.s32 %v810_v43, %v800_v40  ;;  %v834_v58 = vsub.s32 %v831_v47, %v800_v40 }
  0x69   : > { %v717_v4 = vadd.f32 %v681_v2, %v680_v1  ;;  %v683_v8 = vld [vmem:[#allocation2 + $0x68] sm:$0xff]  ;;  %v744_v9 = vadd.f32 %v699_v6, %v698_v5  ;;  %v700_v11 = vld [vmem:[#allocation2 + $0xf0] sm:$0xff]  ;;  %v701_v12 = vld [vmem:[#allocation2 + $0xf8] sm:$0xff]  ;;  %v820_v54 = vsub.s32 %v817_v44, %v800_v40 }
  0x6a   : > { %733 = vadd.xlane.f32.xlu1 %v732_v49  ;;  %v720_v10 = vadd.f32 %v683_v8, %v682_v7  ;;  %v684_v13 = vld [vmem:[#allocation2 + $0x70] sm:$0xff]  ;;  %v685_v14 = vld [vmem:[#allocation2 + $0x78] sm:$0xff]  ;;  %v747_v15 = vadd.f32 %v701_v12, %v700_v11  ;;  %v766_v17 = vld [vmem:[%s1991_s1] sm:$0xff]  ;;  %v845_v7 = vadd.s32 4294967240, %v798_v38 }
  0x6b   : > { %709 = vadd.xlane.f32.xlu0 %v708_v50  ;;  %v723_v16 = vadd.f32 %v685_v14, %v684_v13  ;;  %v767_v18 = vld [vmem:[%s1991_s1 + $0x8] sm:$0xff]  ;;  %v768_v21 = vld [vmem:[%s1991_s1 + $0x10] sm:$0xff]  ;;  %v769_v22 = vld [vmem:[%s1991_s1 + $0x18] sm:$0xff]  ;;  %v806_v50 = vsub.s32 %v803_v42, %v800_v40 }
  0x6c   : > { %v1477_v19 = vpack.c.bf16 %v767_v18, %v766_v17  ;;  %v1480_v23 = vpack.c.bf16 %v769_v22, %v768_v21  ;;  %v770_v24 = vld [vmem:[%s1991_s1 + $0x20] sm:$0xff]  ;;  %v771_v25 = vld [vmem:[%s1991_s1 + $0x28] sm:$0xff]  ;;  %v772_v27 = vld [vmem:[%s1991_s1 + $0x30] sm:$0xff] }
  0x6d   : > { %v1483_v26 = vpack.c.bf16 %v771_v25, %v770_v24  ;;  %v773_v28 = vld [vmem:[%s1991_s1 + $0x38] sm:$0xff]  ;;  %v848_v24 = vsub.s32 %v845_v7, %v800_v40 }
  0x6e   : > { %736 = vadd.xlane.f32.xlu1 %v735_v55  ;;  %1478 = vmatpush3.bf16.msra.mxu0 %v1477_v19  ;;  %v1486_v29 = vpack.c.bf16 %v773_v28, %v772_v27  ;;  %v827_v55 = vsub.s32 %v824_v45, %v800_v40 }
  0x6f   : > { %712 = vadd.xlane.f32.xlu0 %v711_v56  ;;  %1479 = vmatprep.subr.bf16.mxu0 %v1648_v20 }
  0x72   : > { %739 = vadd.xlane.f32.xlu1 %v738_v61  ;;  %1481 = vmatpush3.bf16.msra.mxu0 %v1480_v23 }
  0x73   : > { %715 = vadd.xlane.f32.xlu0 %v714_v62  ;;  %1482 = vmatprep.subr.bf16.mxu0 %v1648_v20 }
  0x76   : > { %742 = vadd.xlane.f32.xlu1 %v741_v3  ;;  %1484 = vmatpush3.bf16.msra.mxu0 %v1483_v26  ;;  %v841_v3 = vsub.s32 %v838_v52, %v800_v40 }
  0x77   : > { %718 = vadd.xlane.f32.xlu0 %v717_v4  ;;  %1485 = vmatprep.subr.bf16.mxu0 %v1648_v20 }
  0x7a   : > { %745 = vadd.xlane.f32.xlu1 %v744_v9  ;;  %1487 = vmatpush3.bf16.msra.mxu0 %v1486_v29 }
  0x7b   : > { %721 = vadd.xlane.f32.xlu0 %v720_v10 }
  0x7e   : > { %748 = vadd.xlane.f32.xlu1 %v747_v15 }
  0x7f   : > { %724 = vadd.xlane.f32.xlu0 %v723_v16 }
  0xef   : > { %v728_v31 = vpop.xlane.xlu1 %727 }
  0xf0   : > { %v704_v32 = vpop.xlane.xlu0 %703  ;;  %v758_v60 = vmul.f32 0.0009765625, %v728_v31 }
  0xf1   : > { %v750_v0 = vmul.f32 0.0009765625, %v704_v32 }
  0xf2   : > { %v855_v12 = vrot.slane %v758_v60, %v801_v48 }
  0xf3   : > { %v731_v33 = vpop.xlane.xlu1 %730  ;;  %v802_v17 = vrot.slane %v750_v0, %v801_v48 }
  0xf4   : > { %v707_v34 = vpop.xlane.xlu0 %706  ;;  %v759_v53 = vmul.f32 0.0009765625, %v731_v33 }
  0xf5   : > { %v751_v56 = vmul.f32 0.0009765625, %v707_v34 }
  0xf6   : > { %v859_v4 = vrot.slane %v759_v53, %v806_v50 }
  0xf7   : > { %v734_v36 = vpop.xlane.xlu1 %733  ;;  %v807_v8 = vrot.slane %v751_v56, %v806_v50  ;;  %v1405_v50 = vld [vmem:[%s1992_s2] ss:$0 sm:$0xff] }
  0xf8   : > { %v710_v37 = vpop.xlane.xlu0 %709  ;;  %v760_v57 = vmul.f32 0.0009765625, %v734_v36  ;;  %v860_v21 = vsel %vm808_vm1, %v859_v4, %v855_v12  ;;  %v1408_v12 = vld [vmem:[%s1994_s4] ss:$0 sm:$0xff] }
  0xf9   : > { %v752_v61 = vmul.f32 0.0009765625, %v710_v37  ;;  %v809_v25 = vsel %vm808_vm1, %v807_v8, %v802_v17  ;;  %v1409_v17 = vld [vmem:[%s1996_s6] ss:$0 sm:$0xff] }
  0xfa   : > { %v864_v9 = vrot.slane %v760_v57, %v813_v51 }
  0xfb   : > { %v737_v39 = vpop.xlane.xlu1 %736  ;;  %v814_v13 = vrot.slane %v752_v61, %v813_v51 }
  0xfc   : > { %v713_v41 = vpop.xlane.xlu0 %712  ;;  %v761_v62 = vmul.f32 0.0009765625, %v737_v39  ;;  %v865_v26 = vsel %vm815_vm2, %v864_v9, %v860_v21 }
  0xfd   : > { %v753_v1 = vmul.f32 0.0009765625, %v713_v41  ;;  %v816_v31 = vsel %vm815_vm2, %v814_v13, %v809_v25 }
  0xfe   : > { %v869_v14 = vrot.slane %v761_v62, %v820_v54 }
  0xff   : > { %v740_v46 = vpop.xlane.xlu1 %739  ;;  %v821_v18 = vrot.slane %v753_v1, %v820_v54 }
 0x100   : > { %v716_v49 = vpop.xlane.xlu0 %715  ;;  %v762_v2 = vmul.f32 0.0009765625, %v740_v46  ;;  %v870_v32 = vsel %vm822_vm3, %v869_v14, %v865_v26 }
 0x101   : > { %v754_v5 = vmul.f32 0.0009765625, %v716_v49  ;;  %v823_v36 = vsel %vm822_vm3, %v821_v18, %v816_v31  ;;  %v1006_v49 = vld [vmem:[%s1995_s5] sm:$0xf] }
 0x102   : > { %v874_v19 = vrot.slane %v762_v2, %v827_v55  ;;  %1462 = vmatpush3.msk.msra.mxu1 %vm1018_vm10, %v1006_v49  ;;  %v1414_v49 = vld [vmem:[%s2000_s10] ss:$0 sm:$0xff] }
 0x103   : > { %v743_v59 = vpop.xlane.xlu1 %742  ;;  %v828_v22 = vrot.slane %v754_v5, %v827_v55  ;;  %1466 = vmatprep.subr.mxu1 %v1650_v30 }
 0x104   : > { %v719_v63 = vpop.xlane.xlu0 %718  ;;  %v763_v6 = vmul.f32 0.0009765625, %v743_v59  ;;  %v875_v37 = vsel %vm829_vm4, %v874_v19, %v870_v32 }
 0x105   : > { %v755_v10 = vmul.f32 0.0009765625, %v719_v63  ;;  %v830_v39 = vsel %vm829_vm4, %v828_v22, %v823_v36 }
 0x106   : > { %v879_v23 = vrot.slane %v763_v6, %v834_v58 }
 0x107   : > { %v746_v11 = vpop.xlane.xlu1 %745  ;;  %v835_v27 = vrot.slane %v755_v10, %v834_v58  ;;  %v1407_v10 = vld [vmem:[%s1993_s3] ss:$0 sm:$0xff] }
 0x108   : > { %v764_v15 = vmul.f32 0.0009765625, %v746_v11  ;;  %v722_v16 = vpop.xlane.xlu0 %721  ;;  %v880_v40 = vsel %vm836_vm5, %v879_v23, %v875_v37 }
 0x109   : > { %v756_v20 = vmul.f32 0.0009765625, %v722_v16  ;;  %v837_v42 = vsel %vm836_vm5, %v835_v27, %v830_v39  ;;  %v1130_v16 = vld [vmem:[%s1999_s9] sm:$0xf] }
 0x10a   : > { %v884_v28 = vrot.slane %v764_v15, %v841_v3 }
 0x10b   : > { %v749_v29 = vpop.xlane.xlu1 %748  ;;  %v842_v33 = vrot.slane %v756_v20, %v841_v3 }
 0x10c   : > { %v765_v34 = vmul.f32 0.0009765625, %v749_v29  ;;  %v725_v35 = vpop.xlane.xlu0 %724  ;;  %v885_v43 = vsel %vm843_vm6, %v884_v28, %v880_v40 }
 0x10d   : > { %v757_v38 = vmul.f32 0.0009765625, %v725_v35  ;;  %v844_v45 = vsel %vm843_vm6, %v842_v33, %v837_v42  ;;  %v1412_v42 = vld [vmem:[%s1997_s7] ss:$0 sm:$0xff] }
 0x10e   : > { %v889_v41 = vrot.slane %v765_v34, %v848_v24 }
 0x10f   : > { %v849_v44 = vrot.slane %v757_v38, %v848_v24 }
 0x110   : > { %v890_v46 = vsel %vm850_vm7, %v889_v41, %v885_v43 }
 0x111   : > { %v851_v47 = vsel %vm850_vm7, %v849_v44, %v844_v45  ;;  %v1413_v44 = vld [vmem:[%s1998_s8] ss:$0 sm:$0xff] }
 0x112   : > { %v892_v48 = vsel %vm891_vm8, %v890_v46, %v851_v47 }
 0x113   : > { %1459 = vmatmul.mubr.msk.f32.vlgmr.msra.gmra.mrb[0].mxu0 %vm893_vm9, %v892_v48  ;;  %v1252_v48 = vld [vmem:[%s2003_s13] sm:$0xf] }
 0x1e6   : > { %v962_v51 = vpop.f32.mrb[0].mxu0 }
 0x1e7   : > { %v963_v52 = vadd.f32 %v1405_v50, %v962_v51  ;;  %v1460_v53 = vpop.f32.mrb[1].mxu0 }
 0x1e9   : > { %v967_v54 = vsel %vm966_vm11, %v963_v52, 0.0 }
 0x1ea   : > { %v968_v55 = vrot.slane %v967_v54, 4 }
 0x1ec   : > { %v969_v56 = vadd.f32 %v968_v55, %v967_v54 }
 0x1ee   : > { %v970_v57 = vrot.slane %v969_v56, 2 }
 0x1f0   : > { %v971_v58 = vadd.f32 %v970_v57, %v969_v56 }
 0x1f2   : > { %v972_v59 = vrot.slane %v971_v58, 1 }
 0x1f4   : > { %v973_v60 = vadd.f32 %v972_v59, %v971_v58 }
 0x1f6   : > { %v975_v61 = vmul.f32 0.5, %v973_v60 }
 0x1f8   : > { %v976_v62 = vsub.f32 %v963_v52, %v975_v61 }
 0x1fa   : > { %v977_v63 = vmul.f32 %v976_v62, %v976_v62 }
 0x1fc   : > { %v978_v0 = vsel %vm966_vm11, %v977_v63, 0.0 }
 0x1fd   : > { %v979_v1 = vrot.slane %v978_v0, 4 }
 0x1ff   : > { %v980_v2 = vadd.f32 %v979_v1, %v978_v0 }
 0x201   : > { %v981_v3 = vrot.slane %v980_v2, 2 }
 0x203   : > { %v982_v4 = vadd.f32 %v981_v3, %v980_v2 }
 0x205   : > { %v983_v5 = vrot.slane %v982_v4, 1 }
 0x207   : > { %v984_v6 = vadd.f32 %v983_v5, %v982_v4 }
 0x209   : > { %v985_v7 = vmul.f32 0.5, %v984_v6 }
 0x20b   : > { %v986_v8 = vadd.f32 1e-05, %v985_v7 }
 0x20d   : > { %1541 = vrsqrt.f32 %v986_v8  ;;  %v1417_v8 = vld [vmem:[%s2001_s11] ss:$0 sm:$0xff] }
 0x217   : > { %v1542_v9 = vpop.eup %1541 }
 0x218   : > { %v988_v11 = vmul.f32 %v1542_v9, %v976_v62 }
 0x21a   : > { %v996_v13 = vmul.f32 %v1407_v10, %v988_v11  ;;  %v1418_v10 = vld [vmem:[%s2002_s12] ss:$0 sm:$0xff] }
 0x21c   : > { %v1004_v14 = vadd.f32 %v1408_v12, %v996_v13 }
 0x21e   : > { %v1005_v15 = vmax.f32 %v1004_v14, 0.0  ;;  %v1419_v14 = vld [vmem:[%s2004_s14] ss:$0 sm:$0xff] }
 0x220   : > { %1464 = vmatmul.mubr.msk.f32.vlgmr.msra.gmra.mrb[0].mxu1 %vm1014_vm12, %v1005_v15 }
 0x221   : > { %1468 = vmatprep.mubr.msk.f32.mxu1 %vm1649_vm0, %v1650_v30  ;;  %1467 = vmatpush3.msk.msra.mxu1 %vm1018_vm10, %v1130_v16 }
 0x222   : > { %1471 = vmatprep.subr.mxu1 %v1650_v30 }
 0x2f3   : > { %v1088_v18 = vpop.f32.mrb[0].mxu1 }
 0x2f4   : > { %v1089_v19 = vadd.f32 %v1409_v17, %v1088_v18  ;;  %v1465_v20 = vpop.f32.mrb[1].mxu1 }
 0x2f6   : > { %v1092_v21 = vsel %vm966_vm11, %v1089_v19, 0.0 }
 0x2f7   : > { %v1093_v22 = vrot.slane %v1092_v21, 4 }
 0x2f9   : > { %v1094_v23 = vadd.f32 %v1093_v22, %v1092_v21 }
 0x2fb   : > { %v1095_v24 = vrot.slane %v1094_v23, 2 }
 0x2fd   : > { %v1096_v25 = vadd.f32 %v1095_v24, %v1094_v23 }
 0x2ff   : > { %v1097_v26 = vrot.slane %v1096_v25, 1 }
 0x301   : > { %v1098_v27 = vadd.f32 %v1097_v26, %v1096_v25 }
 0x303   : > { %v1099_v28 = vmul.f32 0.5, %v1098_v27 }
 0x305   : > { %v1100_v29 = vsub.f32 %v1089_v19, %v1099_v28 }
 0x307   : > { %v1101_v31 = vmul.f32 %v1100_v29, %v1100_v29 }
 0x309   : > { %v1102_v32 = vsel %vm966_vm11, %v1101_v31, 0.0 }
 0x30a   : > { %v1103_v33 = vrot.slane %v1102_v32, 4 }
 0x30c   : > { %v1104_v34 = vadd.f32 %v1103_v33, %v1102_v32 }
 0x30e   : > { %v1105_v35 = vrot.slane %v1104_v34, 2 }
 0x310   : > { %v1106_v36 = vadd.f32 %v1105_v35, %v1104_v34 }
 0x312   : > { %v1107_v37 = vrot.slane %v1106_v36, 1 }
 0x314   : > { %v1108_v38 = vadd.f32 %v1107_v37, %v1106_v36 }
 0x316   : > { %v1109_v39 = vmul.f32 0.5, %v1108_v38 }
 0x318   : > { %v1110_v40 = vadd.f32 1e-05, %v1109_v39 }
 0x31a   : > { %1543 = vrsqrt.f32 %v1110_v40 }
 0x324   : > { %v1544_v41 = vpop.eup %1543 }
 0x325   : > { %v1112_v43 = vmul.f32 %v1544_v41, %v1100_v29 }
 0x327   : > { %v1120_v45 = vmul.f32 %v1412_v42, %v1112_v43 }
 0x329   : > { %v1128_v46 = vadd.f32 %v1413_v44, %v1120_v45 }
 0x32b   : > { %v1129_v47 = vmax.f32 %v1128_v46, 0.0 }
 0x32d   : > { %1469 = vmatmul.mubr.msk.f32.vlgmr.msra.gmra.mrb[2].mxu1 %vm1014_vm12, %v1129_v47 }
 0x32e   : > { %1473 = vmatprep.mubr.msk.f32.mxu1 %vm1649_vm0, %v1650_v30  ;;  %1472 = vmatpush3.msk.msra.mxu1 %vm1018_vm10, %v1252_v48 }
 0x400   : > { %v1210_v50 = vpop.f32.mrb[2].mxu1 }
 0x401   : > { %v1211_v51 = vadd.f32 %v1414_v49, %v1210_v50  ;;  %v1470_v52 = vpop.f32.mrb[3].mxu1 }
 0x403   : > { %v1214_v53 = vsel %vm966_vm11, %v1211_v51, 0.0 }
 0x404   : > { %v1215_v54 = vrot.slane %v1214_v53, 4 }
 0x406   : > { %v1216_v55 = vadd.f32 %v1215_v54, %v1214_v53 }
 0x408   : > { %v1217_v56 = vrot.slane %v1216_v55, 2 }
 0x40a   : > { %v1218_v57 = vadd.f32 %v1217_v56, %v1216_v55 }
 0x40c   : > { %v1219_v30 = vrot.slane %v1218_v57, 1 }
 0x40e   : > { %v1220_v58 = vadd.f32 %v1219_v30, %v1218_v57 }
 0x410   : > { %v1221_v59 = vmul.f32 0.5, %v1220_v58 }
 0x412   : > { %v1222_v60 = vsub.f32 %v1211_v51, %v1221_v59 }
 0x414   : > { %v1223_v61 = vmul.f32 %v1222_v60, %v1222_v60 }
 0x416   : > { %v1224_v62 = vsel %vm966_vm11, %v1223_v61, 0.0 }
 0x417   : > { %v1225_v63 = vrot.slane %v1224_v62, 4 }
 0x419   : > { %v1226_v0 = vadd.f32 %v1225_v63, %v1224_v62 }
 0x41b   : > { %v1227_v1 = vrot.slane %v1226_v0, 2 }
 0x41d   : > { %v1228_v2 = vadd.f32 %v1227_v1, %v1226_v0 }
 0x41f   : > { %v1229_v3 = vrot.slane %v1228_v2, 1 }
 0x421   : > { %v1230_v4 = vadd.f32 %v1229_v3, %v1228_v2 }
 0x423   : > { %v1231_v5 = vmul.f32 0.5, %v1230_v4 }
 0x425   : > { %v1232_v6 = vadd.f32 1e-05, %v1231_v5 }
 0x427   : > { %1545 = vrsqrt.f32 %v1232_v6 }
 0x431   : > { %v1546_v7 = vpop.eup %1545 }
 0x432   : > { %v1234_v9 = vmul.f32 %v1546_v7, %v1222_v60 }
 0x434   : > { %v1242_v11 = vmul.f32 %v1417_v8, %v1234_v9 }
 0x436   : > { %v1250_v12 = vadd.f32 %v1418_v10, %v1242_v11 }
 0x438   : > { %v1251_v13 = vmax.f32 %v1250_v12, 0.0 }
 0x43a   : > { %1474 = vmatmul.mubr.msk.f32.vlgmr.msra.gmra.mrb[4].mxu1 %vm1014_vm12, %v1251_v13 }
 0x50d   : > { %v1332_v15 = vpop.f32.mrb[4].mxu1 }
 0x50e   : > { %v1333_v16 = vadd.f32 %v1419_v14, %v1332_v15  ;;  %v1475_v17 = vpop.f32.mrb[5].mxu1 }
 0x510   : > { %1337 = vst.msk [vmem:[#allocation6] sm:$0x3] %vm1336_vm13, %v1333_v16 }
 0x511 PF: > { %p1499_p8 = scmp.eq.s32.totalorder %s1751_s22, 3  ;;  %s1651_s27 = smov [#allocation6]  }
 0x512   : > { %s1345_s24 = sshll.u32 %s1651_s27, 4  ;;  %s1346_s24 = int_to_ptr.vmem [resolvable:$true] %s1345_s24 }
 0x513   : > { %s1577_s25 = scalar_lea.vmem %s1346_s24, 32  ;;  %p1584_p9 = scmp.lt.s32.totalorder %s1346_s24, %s1346_s24 }
 0x514   : > { %p1578_p4 = scmp.ne.s32.totalorder %s1346_s24, %s1577_s25  ;;  %p1585_p11 = scmp.lt.s32.totalorder %s1577_s25, %s1577_s25 }
 0x516   : > { %p1579_p5 = pnand %p1578_p4, %p1499_p8  ;;  %p1586_p13 = por %p1585_p11, %p1584_p9 }
 0x518   : > { %p1580_p6 = pneg %p1579_p5 }
 0x51a   : > { %p1587_p0 = pnand %p1586_p13, %p1580_p6 }
 0x51c   : > { %1590 = shalt.err (!%p1587_p0)
}
 0x51d   : > { %s1591_s18 = scalar_lea.hbm %s2005_s15, 32 }
 0x51e   : > { %p1592_p1 = scmp.ne.s32.totalorder %s2005_s15, %s1591_s18  ;;  %p1597_p2 = scmp.lt.u32.totalorder %s1591_s18, %s2005_s15 }
 0x520   : > { %p1593_p10 = pnand %p1592_p1, %p1499_p8 }
 0x522   : > { %p1594_p12 = pneg %p1593_p10 }
 0x524   : > { %p1599_p3 = pnand %p1597_p2, %p1594_p12 }
 0x526   : > { %1602 = shalt.err (!%p1599_p3)
}
 0x527   : > { %1491 = dma.vmem_to_hbm [thread:$0]  (%p1499_p8), %s1346_s24, 32, %s2005_s15, [#allocation5]  }
 0x528   : > { %1624 = dma.done.wait (%p1499_p8), [#allocation5], 32  }
 0x529   : > { %1626 = vsyncadd (%p1499_p8), [#allocation5], 4294967264 }
 0x52a PF: > { %s2014_s21 = sld [smem:[#allocation10_spill]]  ;;  %s2015_s26 = sld [smem:[#allocation9_spill]] }
 0x52b   : > { %s2016_s20 = sld [smem:[#allocation11_spill]]  ;;  %s2017_s18 = smov %s1633_s19 }
 0x530   : > { %p26_p7 = scmp.ge.s32.totalorder %s2014_s21, 6   ;;  %s2018_s19 = smov %s2015_s26 }
 0x532   :  { %28 = sbr.rel (!%p26_p7) target bundleno = 4 (0x4), region = 125 }
 0x539   :  { %1358 = vsyncpa [#allocation4], 1 }
 0x53a   :  { %1360 = vsyncpa [#allocation4 + $0x1], 1 }
 0x53b   :  { %1361 = vsyncpa [#allocation5], 1 }
 0x53c   :  { %1363 = vsyncpa [#allocation5 + $0x1], 1 }

</bundles_post_ra>
